<compile_context>
chip_gen: v6e
topology: v6e:2x2x1
jax: 0.10.0
libtpu: 0.0.40
codegen_flags: <defaults>
</compile_context>

<pallas_src>
import functools
import math

import jax
import jax.numpy as jnp
from jax.experimental import pallas as pl
from jax.experimental.pallas import tpu as pltpu


_LANE = 128  # last dim of every block is 128 -> full-width vector stores


def _round_up(n: int, m: int) -> int:
    return ((n + m - 1) // m) * m


def _pe_dropout_kernel(seed_ref, x_ref, pe_ref, o_ref, *,
                       dropout_p, apply_dropout, block_rows, total_rows):
    """One grid step: one (1, block_rows, 128) tile of one batch element.

    seed_ref : SMEM scalar-prefetch, shape (1,), int32
    x_ref    : (1, block_rows, 128) input tile
    pe_ref   : (1, block_rows, 128) positional-encoding tile (shared across batch)
    o_ref    : (1, block_rows, 128) output tile
    """
    r = pl.program_id(0)   # row-tile index (outer grid axis)
    b = pl.program_id(1)   # batch index (inner grid axis -> PE tile is reused)

    # Elementwise add in the input dtype (no f32 upcast; the op is HBM-bound).
    y = x_ref[...] + pe_ref[...]

    if apply_dropout:
        shape = (1, block_rows, _LANE)
        # Global element index of every lane in this tile. int32 counter; wraps for
        # tensors with > 2**31 elements, which is harmless for a dropout hash.
        row_ids = jax.lax.broadcasted_iota(jnp.int32, shape, 1)
        lane_ids = jax.lax.broadcasted_iota(jnp.int32, shape, 2)
        base = b * total_rows + r * block_rows
        idx = ((base + row_ids) * _LANE + lane_ids).astype(jnp.uint32)

        # Cheap 2-round stateless integer mix (counter-based PRNG).  Deterministic per
        # (seed, element index) and independent of tiling / grid order.  ~6 VALU ops
        # per element so it stays hidden under the HBM stream on v5e/v6e/v7x.
        # Does NOT bit-match PyTorch's RNG stream (documented).
        h = idx ^ (seed_ref[0].astype(jnp.uint32) * jnp.uint32(0x9E3779B9))
        h = h * jnp.uint32(0x9E3779B1)
        h = h ^ (h >> jnp.uint32(15))
        h = h * jnp.uint32(0x85EBCA77)
        h = h ^ (h >> jnp.uint32(13))

        # Integer threshold compare: keep with probability (1 - p).
        thr = jnp.uint32(min(0xFFFFFFFF, int(round(dropout_p * 4294967296.0))))
        keep = h >= thr
        scale = jnp.asarray(1.0 / (1.0 - dropout_p), dtype=y.dtype)
        y = jnp.where(keep, y * scale, jnp.zeros_like(y))

    o_ref[...] = y


def make_positional_encoding(embedding_size: int, max_len: int = 5000,
                             dtype=jnp.float32) -> jnp.ndarray:
    """Positional-encoding table, identical to the PyTorch __init__: (1, max_len, E)."""
    position = jnp.arange(max_len, dtype=jnp.float32)[:, None]                      # (max_len, 1)
    div_term = jnp.exp(
        jnp.arange(0, embedding_size, 2, dtype=jnp.float32)
        * (-math.log(10000.0) / embedding_size)
    )                                                                               # (E/2,)
    pe = jnp.zeros((1, max_len, embedding_size), dtype=jnp.float32)
    pe = pe.at[0, :, 0::2].set(jnp.sin(position * div_term))
    pe = pe.at[0, :, 1::2].set(jnp.cos(position * div_term))
    return pe.astype(dtype)


def pe_to_lane_dense(pe: jnp.ndarray) -> jnp.ndarray:
    """Convert (1, max_len, E) -> (1, P, 128) once at init (kernel-native layout).

    Doing this (and any dtype cast) at init keeps the per-call forward free of extra
    XLA slice/cast/copy kernels on the PE buffer.
    """
    flat = pe.reshape(1, -1)
    total = flat.shape[1]
    rows = max(8, _round_up(pl.cdiv(total, _LANE), 8))
    pad = rows * _LANE - total
    if pad:
        flat = jnp.pad(flat, ((0, 0), (0, pad)))
    return flat.reshape(1, rows, _LANE)


def positional_encoding_forward(x, pe_lane, *, dropout_p=0.1, training=True, seed=0):
    """x: (B, S, E).  pe_lane: lane-dense PE buffer from pe_to_lane_dense()
    (a raw (1, max_len, E) table is also accepted and converted on the fly).
    Returns (B, S, E) = dropout(x + pe[:, :S, :])."""
    B, S, E = x.shape
    dtype = x.dtype

    p = float(dropout_p)
    apply_dropout = bool(training) and p > 0.0
    if apply_dropout and p >= 1.0:
        # Degenerate case (PyTorch returns all zeros); avoids the 1/(1-p) blow-up.
        return jnp.zeros_like(x)

    if pe_lane.shape[-1] != _LANE:
        pe_lane = pe_to_lane_dense(pe_lane)   # glue path; prefer converting once at init
    if pe_lane.dtype != dtype:
        pe_lane = pe_lane.astype(dtype)       # glue path; prefer casting once at init

    # ---- lane-dense input layout: (B, S, E) -> (B, M, 128), M a multiple of 8 ------
    n_valid = S * E
    M = max(8, _round_up(pl.cdiv(n_valid, _LANE), 8))
    x_flat = x.reshape(B, n_valid)
    pad = M * _LANE - n_valid
    if pad:
        x_flat = jnp.pad(x_flat, ((0, 0), (0, pad)))
    x_in = x_flat.reshape(B, M, _LANE)

    # ---- tile size: ~4 MiB per buffer, rows a multiple of 8 ------------------------
    # Budget: 3 arrays (x, pe, out) x 2 pipeline buffers x 4 MiB = 24 MiB, within the
    # explicit scoped-VMEM limit set below on all of v5e / v6e / v7x (64 MiB physical).
    itemsize = jnp.dtype(dtype).itemsize
    target_rows = max(8, ((4 * 1024 * 1024) // (_LANE * itemsize)) // 8 * 8)
    TR = min(M, target_rows)
    grid_r = pl.cdiv(M, TR)
    # v7x has 2 TensorCores: make sure there are at least 2 grid steps to shard.
    if B * grid_r < 2 and M >= 16:
        TR = max(8, ((M // 2) // 8) * 8)
        grid_r = pl.cdiv(M, TR)

    seed_arr = jnp.array([int(seed)], dtype=jnp.int32)
    kernel = functools.partial(
        _pe_dropout_kernel,
        dropout_p=p,
        apply_dropout=apply_dropout,
        block_rows=TR,
        total_rows=M,
    )

    out = pl.pallas_call(
        kernel,
        out_shape=jax.ShapeDtypeStruct((B, M, _LANE), dtype),
        grid_spec=pltpu.PrefetchScalarGridSpec(
            num_scalar_prefetch=1,
            # r outer, b inner: the PE block index is constant across the inner batch
            # loop, so each PE tile is DMA'd once per row tile, not once per (b, r).
            grid=(grid_r, B),
            in_specs=[
                pl.BlockSpec((1, TR, _LANE), lambda r, b, seed: (b, r, 0)),  # x
                pl.BlockSpec((1, TR, _LANE), lambda r, b, seed: (0, r, 0)),  # pe (shared)
            ],
            out_specs=pl.BlockSpec((1, TR, _LANE), lambda r, b, seed: (b, r, 0)),
        ),
        compiler_params=pltpu.CompilerParams(
            # Stateless per-element RNG -> no cross-step dependence; both axes can be
            # sharded across TensorCores on v7x (no-op on v5e/v6e).
            dimension_semantics=("parallel", "parallel"),
            # 3 buffers x 2-deep pipeline x ~4 MiB tiles needs ~24 MiB scoped VMEM;
            # raise the limit explicitly (v5e default is 16 MiB) while leaving
            # headroom under v7x's 64 MiB physical VMEM.
            vmem_limit_bytes=48 * 1024 * 1024,
        ),
    )(seed_arr, x_in, pe_lane)

    if pad:
        return out.reshape(B, M * _LANE)[:, :n_valid].reshape(B, S, E)
    return out.reshape(B, S, E)


if __name__ == "__main__":
    B, S, E = 2, 8, 32
    max_len = 5000
    dropout_p = 0.1

    key = jax.random.PRNGKey(0)
    x = jax.random.normal(key, (B, S, E), dtype=jnp.float32)

    pe = make_positional_encoding(E, max_len=max_len, dtype=x.dtype)   # (1, max_len, E)
    pe_lane = pe_to_lane_dense(pe)                                     # one-time layout prep
    ref = x + pe[:, :S, :]

    # Eval mode (dropout disabled): must match the pure-JAX reference.
    y_eval = positional_encoding_forward(x, pe_lane, dropout_p=dropout_p, training=False)
    y_eval = jax.block_until_ready(y_eval)
    assert y_eval.shape == (B, S, E)
    assert jnp.allclose(y_eval, ref, atol=1e-6), "eval-mode mismatch vs reference"

    # Training mode (deterministic stateless in-kernel dropout).
    y_train = positional_encoding_forward(
        x, pe_lane, dropout_p=dropout_p, training=True, seed=0
    )
    y_train = jax.block_until_ready(y_train)
    assert y_train.shape == (B, S, E)
    scale = 1.0 / (1.0 - dropout_p)
    ok = jnp.isclose(y_train, 0.0, atol=1e-6) | jnp.isclose(y_train, ref * scale, atol=1e-5)
    assert bool(jnp.all(ok)), "training-mode values are not in {0, (x+pe)/(1-p)}"

    print("KERNEL_OK")
</pallas_src>

<mosaic_0001>
module attributes {stable_mosaic.version = 11 : i64} {
  func.func @_pe_dropout_kernel(%arg0: i32, %arg1: i32, %arg2: memref<1xi32, #tpu.memory_space<smem>>, %arg3: memref<1x8x128xf32, #tpu.memory_space<vmem>>, %arg4: memref<1x8x128xf32, #tpu.memory_space<vmem>>, %arg5: memref<1x8x128xf32, #tpu.memory_space<vmem>>) attributes {dimension_semantics = [#tpu.dimension_semantics<parallel>, #tpu.dimension_semantics<parallel>], iteration_bounds = array<i64: 1, 2>, scalar_prefetch = 1 : i64, scratch_operands = 0 : i64, tpu.core_type = #tpu.core_type<tc>, window_params = [{transform_indices = @transform_0, window_bounds = array<i64: 1, 8, 128>}, {transform_indices = @transform_1, window_bounds = array<i64: 1, 8, 128>}, {transform_indices = @transform_2, window_bounds = array<i64: 1, 8, 128>}]} {
    %c0 = arith.constant 0 : index
    %c0_0 = arith.constant 0 : index
    %c0_1 = arith.constant 0 : index
    %0 = vector.load %arg3[%c0, %c0_0, %c0_1] : memref<1x8x128xf32, #tpu.memory_space<vmem>>, vector<1x8x128xf32>
    %c0_2 = arith.constant 0 : index
    %c0_3 = arith.constant 0 : index
    %c0_4 = arith.constant 0 : index
    %1 = vector.load %arg4[%c0_2, %c0_3, %c0_4] : memref<1x8x128xf32, #tpu.memory_space<vmem>>, vector<1x8x128xf32>
    %2 = arith.addf %0, %1 : vector<1x8x128xf32>
    %c0_5 = arith.constant 0 : index
    %c0_6 = arith.constant 0 : index
    %c0_7 = arith.constant 0 : index
    %3 = vector.load %arg5[%c0_5, %c0_6, %c0_7] : memref<1x8x128xf32, #tpu.memory_space<vmem>>, vector<1x8x128xf32>
    tpu.vector_store %arg5[%c0_5, %c0_6, %c0_7], %2 {strides = array<i32>} : memref<1x8x128xf32, #tpu.memory_space<vmem>>, vector<1x8x128xf32>,
    return
  }
  func.func @transform_0(%arg0: i32, %arg1: i32, %arg2: memref<1xi32, #tpu.memory_space<smem>>) -> (i32, i32, i32) {
    %c0_i32 = arith.constant 0 : i32
    %c0_i32_0 = arith.constant 0 : i32
    return %arg1, %arg0, %c0_i32 : i32, i32, i32
  }
  func.func @transform_1(%arg0: i32, %arg1: i32, %arg2: memref<1xi32, #tpu.memory_space<smem>>) -> (i32, i32, i32) {
    %c0_i32 = arith.constant 0 : i32
    %c0_i32_0 = arith.constant 0 : i32
    %c0_i32_1 = arith.constant 0 : i32
    return %c0_i32, %arg0, %c0_i32_0 : i32, i32, i32
  }
  func.func @transform_2(%arg0: i32, %arg1: i32, %arg2: memref<1xi32, #tpu.memory_space<smem>>) -> (i32, i32, i32) {
    %c0_i32 = arith.constant 0 : i32
    %c0_i32_0 = arith.constant 0 : i32
    return %arg1, %arg0, %c0_i32 : i32, i32, i32
  }
}

</mosaic_0001>

<bundles_post_ra>
// kernel: tpu_custom_call.1
= control target key start
LH: loop header
LB: loop body
LE: loop exit
PB: predicated region body
PF: predicated region fallthrough
CT: control target
= control target key end

     0   :  { %9 = vsyncpa [#allocation5], 0  ;;  %s721_s0 = inlined_call_operand.<no memory space> [shape: s32[1], index: 0, kind: input, shape index: {}]   ;;  %s722_s1 = inlined_call_operand.hbm [shape: f32[2,8,128], index: 1, kind: input, shape index: {}]   ;;  %s723_s2 = inlined_call_operand.hbm [shape: f32[1,1256,128], index: 2, kind: input, shape index: {}]   ;;  %s724_s3 = inlined_call_operand.hbm [shape: f32[2,8,128], index: 3, kind: output, shape index: {}]  }
   0x1   :  { %11 = vsyncpa [#allocation5 + $0x1], 0 }
   0x2   :  { %12 = vsyncpa [#allocation8], 0 }
   0x3   :  { %13 = vsyncpa [#allocation6], 0 }
   0x4   :  { %15 = vsyncpa [#allocation6 + $0x1], 0  ;;  %s560_s12 = smov 0   ;;  %s562_s13 = smov 0  }
   0x5   :  { %s564_s14 = smov 0   ;;  %s566_s0 = smov 0  }
   0x6   :  { %s568_s15 = smov 0   ;;  %s570_s16 = smov 0  }
   0x7 LB: > { %s309_s17 = sadd.s32 4294967295, %s535_s16   ;;  %s310_s18 = sadd.s32 4294967294, %s535_s16   ;;  %s535_s16 = sphi %s570_s16, %s21_s16   ;;  %s531_s15 = sphi %s568_s15, %s741_s15   ;;  %s527_s0 = sphi %s566_s0, %s740_s0   ;;  %s523_s14 = sphi %s564_s14, %s739_s14   ;;  %s519_s13 = sphi %s562_s13, %s738_s13   ;;  %s515_s12 = sphi %s560_s12, %s737_s12  }
   0x8   : > { %p55_p0 = scmp.ne.s32.totalorder %s519_s13, %s515_s12  ;;  %p594_p1 = scmp.eq.s32.totalorder %s309_s17, 0 }
   0x9   : > { %p598_p2 = scmp.eq.s32.totalorder %s309_s17, 1  ;;  %p113_p3 = scmp.eq.s32.totalorder %s310_s18, 1 }
   0xa   : > { %p604_p4 = por %p594_p1, %p55_p0  ;;  %p311_p5 = scmp.ge.s32.totalorder %s535_s16, 1 }
   0xb   : > { %p609_p6 = por %p113_p3, %p55_p0  ;;  %p120_p7 = scmp.lt.s32.totalorder %s535_s16, 3 }
   0xc   : > { %s728_s21 = scalar_select %p604_p4, 1, 0 }
   0xd   : > { %s729_s22 = scalar_select %p609_p6, 1, 0 }
   0xe   : > { %p614_p8 = pnand %p311_p5, %p120_p7  ;;  %s537_s24 = smov [#allocation7]  }
   0xf   : > { %s135_s25 = sshll.u32 %s537_s24, 4  ;;  %s30_s27 = sadd.s32 1, %s531_s15  ;;  %s136_s25 = int_to_ptr.vmem [resolvable:$true] %s135_s25 }
  0x10   : > { %p332_p10 = pneg %p614_p8  ;;  %s42_s28 = sadd.s32 1, %s523_s14 }
  0x11   : > { %p31_p12 = scmp.ge.s32.totalorder %s30_s27, 2  ;;  %s408_s29 = scalar_lea.vmem %s136_s25, 128 }
  0x12   : > { %p623_p11 = pnand %p332_p10, %p594_p1  ;;  %p409_p0 = scmp.ne.s32.totalorder %s136_s25, %s408_s29 }
  0x13   : > { %p416_p7 = scmp.lt.s32.totalorder %s136_s25, %s136_s25  ;;  %p417_p6 = scmp.lt.s32.totalorder %s408_s29, %s408_s29 }
  0x14   : > { %p399_p13 = pneg %p623_p11 }
  0x15   : > { %p418_p9 = por %p417_p6, %p416_p7 }
  0x16   : > { %p411_p3 = pnand %p409_p0, %p399_p13 }
  0x18   : > { %p412_p5 = pneg %p411_p3 }
  0x1a   : > { %p419_p4 = pnand %p418_p9, %p412_p5 }
  0x1c   : > { %422 = shalt.err (!%p419_p4)
}
  0x1d   : > { %335 = dma.hbm_to_vmem [thread:$0]  (!%p623_p11), %s723_s2, 128, %s136_s25, [#allocation8]  }
  0x1e   : > { %s743_s27 = smov (%p31_p12, %s30_s27), 0  ;;  %p49_p6 = scmp.ne.s32.totalorder %s523_s14, %s519_s13 }
  0x1f   : > { %p50_p4 = scmp.eq.s32.totalorder %s535_s16, 0  ;;  %s37_s5 = ssub.s32 %s531_s15, %s743_s27 }
  0x20   : > { %p345_p9 = scmp.lt.s32.totalorder %s535_s16, 2  ;;  %p40_p10 = scmp.eq.s32.totalorder %s37_s5, 0 }
  0x21   : > { %p51_p13 = por %p50_p4, %p49_p6  ;;  %p646_p0 = por %p598_p2, %p49_p6 }
  0x22   : > { %s146_s7 = sand.u32 1, %s523_s14   ;;  %s315_s10 = sshll.u32 %s531_s15, 7 }
  0x23   : > { %s652_s8 = scalar_select %p40_p10, %s523_s14, %s42_s28  }
  0x24   : > { %s314_s9 = sshll.u32 %s146_s7, 3  ;;  %s156_s18 = scalar_lea.hbm %s722_s1, %s315_s10 }
  0x25   : > { %s150_s24 = scalar_lea.vmem [#allocation4], %s314_s9  ;;  %p658_p11 = pnand %p345_p9, %p51_p13 }
  0x26   : > { %s158_s25 = sshll.u32 %s150_s24, 4  ;;  %s147_s20 = scalar_lea.sflag [#allocation5], %s146_s7  ;;  %s159_s25 = int_to_ptr.vmem [resolvable:$true] %s158_s25 }
  0x27   : > { %p425_p2 = pneg %p658_p11  ;;  %s436_s29 = scalar_lea.vmem %s159_s25, 128 }
  0x28   : > { %p437_p12 = scmp.ne.s32.totalorder %s159_s25, %s436_s29  ;;  %s538_s28 = smov [#allocation4]  }
  0x29   : > { %s441_s30 = sshll.u32 %s538_s28, 4  ;;  %s442_s30 = int_to_ptr.vmem [resolvable:$false] %s441_s30 }
  0x2a   : > { %p439_p3 = pnand %p437_p12, %p425_p2  ;;  %s443_s4 = scalar_lea.vmem %s442_s30, 256 }
  0x2b   : > { %p444_p7 = scmp.lt.s32.totalorder %s159_s25, %s442_s30  ;;  %p445_p6 = scmp.lt.s32.totalorder %s443_s4, %s436_s29 }
  0x2c   : > { %p440_p5 = pneg %p439_p3 }
  0x2d   : > { %p446_p4 = por %p445_p6, %p444_p7 }
  0x2f   : > { %p447_p10 = pnand %p446_p4, %p440_p5 }
  0x31   : > { %450 = shalt.err (!%p447_p10)
}
  0x32   : > { %339 = dma.hbm_to_vmem [thread:$0]  (!%p658_p11), %s156_s18, 128, %s159_s25, %s147_s20  }
  0x33   : > { %167 = sbr.rel (%p614_p8) target bundleno = 83 (0x53), region = 28  ;;  %s669_s5 = sand.u32 (!%p614_p8), 1, %s519_s13  }
  0x34   : > { %s317_s7 = sshll.u32 (!%p614_p8), %s669_s5, 3  ;;  %s170_s9 = scalar_lea.sflag (!%p614_p8), [#allocation5], %s669_s5 }
  0x35   : > { %s173_s10 = scalar_lea.vmem (!%p614_p8), [#allocation4], %s317_s7  ;;  %p734_p9 = scmp.ne.s32.totalorder (!%p614_p8), %s728_s21, 0 }
  0x38   : > { %502 = dma.done.wait (%p734_p9), %s170_s9, 128  }
  0x39   : > { %504 = vsyncadd (%p734_p9), %s170_s9, 4294967168 }
  0x3a   : > { %506 = dma.done.wait (%p594_p1), [#allocation8], 128  }
  0x3b   : > { %508 = vsyncadd (%p594_p1), [#allocation8], 4294967168  ;;  %s197_s23 = scalar_lea.vmem [#allocation9], %s317_s7  ;;  %s321_s17 = sshll.u32 %s527_s0, 7  ;;  %v198_v0 = vld [vmem:[%s173_s10] sm:$0xff]  ;;  %v199_v1 = vld [vmem:[#allocation7] sm:$0xff] }
  0x3c   : > { %s217_s11 = sshll.u32 %s197_s23, 4  ;;  %v200_v2 = vadd.f32 %v199_v1, %v198_v0  ;;  %s215_s21 = scalar_lea.hbm %s724_s3, %s321_s17  ;;  %s218_s11 = int_to_ptr.vmem [resolvable:$true] %s217_s11 }
  0x3d   : > { %s203_s25 = scalar_lea.sflag [#allocation6], %s669_s5  ;;  %s451_s26 = scalar_lea.vmem %s218_s11, 128 }
  0x3e   : > { %201 = vst [vmem:[%s197_s23] sm:$0xff] %v200_v2  ;;  %p452_p8 = scmp.ne.s32.totalorder %s218_s11, %s451_s26  ;;  %s539_s19 = smov [#allocation9]  }
  0x3f   : > { %s455_s20 = sshll.u32 %s539_s19, 4  ;;  %s456_s20 = int_to_ptr.vmem [resolvable:$false] %s455_s20 }
  0x40   : > { %p453_p1 = pnand %p452_p8, %p646_p0  ;;  %s457_s29 = scalar_lea.vmem %s456_s20, 256 }
  0x41   : > { %p458_p11 = scmp.lt.s32.totalorder %s218_s11, %s456_s20  ;;  %p459_p2 = scmp.lt.s32.totalorder %s457_s29, %s451_s26 }
  0x42   : > { %p454_p13 = pneg %p453_p1 }
  0x43   : > { %p460_p12 = por %p459_p2, %p458_p11 }
  0x45   : > { %p461_p3 = pnand %p460_p12, %p454_p13 }
  0x47   : > { %464 = shalt.err (!%p461_p3)
}
  0x48   : > { %s465_s0 = scalar_lea.hbm %s215_s21, 128  ;;  %s469_s4 = scalar_lea.hbm %s724_s3, 256 }
  0x49   : > { %p466_p5 = scmp.ne.s32.totalorder %s215_s21, %s465_s0  ;;  %p470_p4 = scmp.lt.s32.totalorder %s215_s21, %s724_s3 }
  0x4a   : > { %p471_p10 = scmp.lt.s32.totalorder %s469_s4, %s465_s0 }
  0x4b   : > { %p467_p7 = pnand %p466_p5, %p646_p0 }
  0x4c   : > { %p472_p9 = por %p471_p10, %p470_p4 }
  0x4d   : > { %p468_p6 = pneg %p467_p7 }
  0x4f   : > { %p473_p8 = pnand %p472_p9, %p468_p6 }
  0x51   : > { %476 = shalt.err (!%p473_p8)
}
  0x52   : > { %330 = dma.vmem_to_hbm [thread:$0]  (%p646_p0), %s218_s11, 128, %s215_s21, %s203_s25  }
  0x53 PF: > { %s229_s9 = sand.u32 1, %s515_s12   ;;  %p735_p1 = scmp.ne.s32.totalorder %s729_s22, 0 }
  0x54   : > { %p736_p13 = scmp.ge.s32.totalorder %s535_s16, 2  ;;  %s230_s10 = scalar_lea.sflag [#allocation6], %s229_s9 }
  0x56   : > { %p341_p11 = pnand %p736_p13, %p735_p1 }
  0x58   : > { %p342_p2 = pneg %p341_p11 }
  0x5a   : > { %510 = dma.done.wait (%p342_p2), %s230_s10, 128  }
  0x5b   : > { %512 = vsyncadd (%p342_p2), %s230_s10, 4294967168  ;;  %s21_s16 = sadd.s32 1, %s535_s16   ;;  %s737_s12 = smov %s519_s13 }
  0x5c   : > { %p18_p12 = scmp.ge.s32.totalorder %s21_s16, 4   ;;  %s738_s13 = smov %s523_s14 }
  0x5d   : > { %s739_s14 = smov %s652_s8  ;;  %s740_s0 = smov %s531_s15 }
  0x5e   : > { %s741_s15 = smov %s743_s27  ;;  %20 = sbr.rel (!%p18_p12) target bundleno = 7 (0x7), region = 78 }
  0x63   :  { %235 = vsyncpa [#allocation5], 1 }
  0x64   :  { %237 = vsyncpa [#allocation5 + $0x1], 1 }
  0x65   :  { %238 = vsyncpa [#allocation8], 1 }
  0x66   :  { %239 = vsyncpa [#allocation6], 1 }
  0x67   :  { %241 = vsyncpa [#allocation6 + $0x1], 1 }

</bundles_post_ra>
